<compile_context>
chip_gen: v7x
topology: tpu7x:2x2x1
jax: 0.10.0
libtpu: 0.0.40
codegen_flags: <defaults>
</compile_context>

<pallas_src>
import jax
import jax.numpy as jnp
from jax.experimental import pallas as pl
from jax.experimental.pallas import tpu as pltpu

K = 3          # Chebyshev polynomial order (kernel_size)
POOL = 4       # Healpix-style max-pool factor over vertices
BN_EPS = 1e-5  # nn.BatchNorm1d default eps


# ------------------------------ Pallas kernels ------------------------------

def lap_matmul_kernel(x_ref, lap_ref, z1_ref):
    """Z1 = T1(L~) x for one column tile of vertices.

    x_ref  : (B*Cin, V)   resident (fetched once, block index constant)
    lap_ref: (V, TV)      streamed column tile of the symmetric scaled Laplacian
    z1_ref : (B*Cin, TV)
    """
    z1_ref[...] = jnp.dot(x_ref[...], lap_ref[...],
                          preferred_element_type=jnp.float32).astype(z1_ref.dtype)


def cheb_fuse_kernel(x_ref, z1_ref, lap_ref, w_ref, b_ref, y_ref, stats_ref):
    """T2 recurrence + single fused weight matmul + bias + BN partial stats.

    x_ref    : (B*Cin, TV)        column tile of T0 x
    z1_ref   : (B*Cin, V)         full T1 x (resident; contraction operand)
    lap_ref  : (V, TV)            column tile of L~
    w_ref    : (B*Cout, K*B*Cin)  block-diagonal (over batch) Chebyshev weights
    b_ref    : (B*Cout, 1)        bias, broadcast over vertices
    y_ref    : (B*Cout, TV)       conv output tile (bf16 intermediate)
    stats_ref: (1, B*Cout, 2)     per-tile [sum, sum-of-squares] over vertices
    """
    tv = y_ref.shape[-1]
    col0 = pl.multiple_of(pl.program_id(0) * tv, tv)

    x_cols = x_ref[...]                        # (BCin, TV) f32
    z1_all = z1_ref[...]                       # (BCin, V)
    z1_cols = z1_ref[:, pl.ds(col0, tv)]       # (BCin, TV)

    # T2 = 2 L~ T1 - T0.  Activations are (channels, vertices) and L~ is
    # symmetric, so the left-multiplication becomes a right-multiplication
    # by the streamed column tile.
    z2_cols = 2.0 * jnp.dot(z1_all, lap_ref[...],
                            preferred_element_type=jnp.float32) - x_cols

    # One MXU call for all K terms and all batches (contraction = K*B*Cin).
    zcat = jnp.concatenate([x_cols, z1_cols, z2_cols], axis=0)
    y = jnp.dot(w_ref[...], zcat, preferred_element_type=jnp.float32) + b_ref[...]
    y_ref[...] = y.astype(y_ref.dtype)

    # Fused BatchNorm statistics (one-pass form), per (batch, channel) row.
    stats_ref[0] = jnp.concatenate(
        [jnp.sum(y, axis=1, keepdims=True),
         jnp.sum(y * y, axis=1, keepdims=True)], axis=1)


def bn_pool_relu_kernel(*refs):
    """Pre-folded BN affine + vertex max-pool + ReLU (applied after the pool).

    refs = (y_chunk_0 .. y_chunk_{POOL-1}, scale, shift, out)
      y_chunk_p : (B*Cout, TQ) bf16  -- vertex-permuted so pool member p of every
                                        group lives in contiguous chunk p
      scale/shift: (B*Cout, 1) f32   -- gamma*rsqrt(var+eps), beta - mean*scale
      out       : (B*Cout, TQ) f32
    """
    *y_refs, scale_ref, shift_ref, out_ref = refs
    s = scale_ref[...]
    b = shift_ref[...]
    m = y_refs[0][...].astype(jnp.float32) * s + b
    for yr in y_refs[1:]:
        m = jnp.maximum(m, yr[...].astype(jnp.float32) * s + b)
    out_ref[...] = jnp.maximum(m, 0.0).astype(out_ref.dtype)


# --------------------------------- wrapper ----------------------------------

def spherical_cheb_bn_pool(x, lap, weights, bias, gamma, beta,
                           *, pool=POOL, eps=BN_EPS):
    """x: (B, V, Cin), lap: (V, V) symmetric scaled Laplacian -> (B, V//pool, Cout)."""
    B, V, Cin = x.shape
    k_, _, Cout = weights.shape
    assert k_ == K, "kernel is specialized to kernel_size=3"
    assert V % pool == 0
    Vp = V // pool
    BCin, BCout = B * Cin, B * Cout

    tile_v = 128 if V % 128 == 0 else V        # conv-pass vertex tile (lane dim)
    tile_q = 128 if Vp % 128 == 0 else Vp      # pool-pass vertex tile (lane dim)
    n_tiles = V // tile_v
    chunk_blocks = Vp // tile_q

    # ---- one-off wrapper-side layout plumbing (plain XLA, outside kernels) ----
    # channels-first folded layout: rows = b*C + c, lanes = vertices
    xt = jnp.transpose(x, (0, 2, 1)).reshape(BCin, V).astype(jnp.float32)
    # vertex permutation: pool member p of group q -> column p*Vp + q, so each
    # pooling group becomes POOL contiguous, lane-aligned column chunks.
    perm = jnp.arange(V, dtype=jnp.int32).reshape(Vp, pool).T.reshape(-1)
    xt = xt[:, perm]
    lap_p = lap.astype(jnp.float32)[perm][:, perm]
    # block-diagonal (over batch) weights: Y = Wbig @ [T0x; T1x; T2x]
    eye_b = jnp.eye(B, dtype=jnp.float32)
    w_t = jnp.transpose(weights.astype(jnp.float32), (0, 2, 1))   # (K, Cout, Cin)
    w_big = jnp.concatenate([jnp.kron(eye_b, w_t[k]) for k in range(K)], axis=1)
    bias_col = jnp.tile(bias.astype(jnp.float32), B).reshape(BCout, 1)

    cp = pltpu.CompilerParams(dimension_semantics=("parallel",),
                              vmem_limit_bytes=32 * 1024 * 1024)

    # ---- pass 1: Z1 = T1(L~) x, column-tiled over vertices --------------------
    z1 = pl.pallas_call(
        lap_matmul_kernel,
        out_shape=jax.ShapeDtypeStruct((BCin, V), jnp.float32),
        grid=(n_tiles,),
        in_specs=[
            pl.BlockSpec((BCin, V), lambda j: (0, 0)),        # x resident
            pl.BlockSpec((V, tile_v), lambda j: (0, j)),      # L~ column tiles stream
        ],
        out_specs=pl.BlockSpec((BCin, tile_v), lambda j: (0, j)),
        compiler_params=cp,
    )(xt, lap_p)

    # ---- pass 2: T2 + fused weight matmul + bias + BN partial statistics ------
    y, part_stats = pl.pallas_call(
        cheb_fuse_kernel,
        out_shape=(
            jax.ShapeDtypeStruct((BCout, V), jnp.bfloat16),       # bf16 intermediate
            jax.ShapeDtypeStruct((n_tiles, BCout, 2), jnp.float32),
        ),
        grid=(n_tiles,),
        in_specs=[
            pl.BlockSpec((BCin, tile_v), lambda j: (0, j)),
            pl.BlockSpec((BCin, V), lambda j: (0, 0)),            # Z1 resident
            pl.BlockSpec((V, tile_v), lambda j: (0, j)),
            pl.BlockSpec((BCout, K * BCin), lambda j: (0, 0)),
            pl.BlockSpec((BCout, 1), lambda j: (0, 0)),
        ],
        out_specs=(
            pl.BlockSpec((BCout, tile_v), lambda j: (0, j)),
            pl.BlockSpec((1, BCout, 2), lambda j: (j, 0, 0)),
        ),
        compiler_params=cp,
    )(xt, z1, lap_p, w_big, bias_col)

    # ---- tiny per-channel reduction + affine pre-fold (wrapper-side glue) -----
    n = float(B * V)
    sums = part_stats[:, :, 0].sum(axis=0).reshape(B, Cout).sum(axis=0)
    sqs = part_stats[:, :, 1].sum(axis=0).reshape(B, Cout).sum(axis=0)
    mean = sums / n
    var = sqs / n - mean * mean                  # biased variance (training-mode BN)
    scale = gamma.astype(jnp.float32) * jax.lax.rsqrt(var + eps)
    shift = beta.astype(jnp.float32) - mean * scale
    scale_col = jnp.tile(scale, B).reshape(BCout, 1)
    shift_col = jnp.tile(shift, B).reshape(BCout, 1)
    # TODO(synk): BatchNorm running_mean/running_var tracking (eval-mode parity
    # with nn.BatchNorm1d) is not implemented; only training-mode statistics.

    # ---- pass 3: BN affine + vertex max-pool + ReLU ----------------------------
    y_chunk_specs = [
        pl.BlockSpec((BCout, tile_q), (lambda t, p=p: (0, p * chunk_blocks + t)))
        for p in range(pool)
    ]
    pooled = pl.pallas_call(
        bn_pool_relu_kernel,
        out_shape=jax.ShapeDtypeStruct((BCout, Vp), jnp.float32),
        grid=(chunk_blocks,),
        in_specs=y_chunk_specs + [
            pl.BlockSpec((BCout, 1), lambda t: (0, 0)),
            pl.BlockSpec((BCout, 1), lambda t: (0, 0)),
        ],
        out_specs=pl.BlockSpec((BCout, tile_q), lambda t: (0, t)),
        compiler_params=cp,
    )(*([y] * pool), scale_col, shift_col)

    # back to [batch, vertices, channels]
    return jnp.transpose(pooled.reshape(B, Cout, Vp), (0, 2, 1))


# ------------------------------ pure-JAX reference --------------------------

def reference(x, lap, weights, bias, gamma, beta, *, pool=POOL, eps=BN_EPS):
    hp = jax.lax.Precision.HIGHEST
    t0 = x
    t1 = jnp.einsum("uv,bvc->buc", lap, t0, precision=hp)
    t2 = 2.0 * jnp.einsum("uv,bvc->buc", lap, t1, precision=hp) - t0
    y = (jnp.einsum("bvc,co->bvo", t0, weights[0], precision=hp)
         + jnp.einsum("bvc,co->bvo", t1, weights[1], precision=hp)
         + jnp.einsum("bvc,co->bvo", t2, weights[2], precision=hp)
         + bias)
    mean = jnp.mean(y, axis=(0, 1))
    var = jnp.mean((y - mean) ** 2, axis=(0, 1))
    y = (y - mean) * jax.lax.rsqrt(var + eps) * gamma + beta
    y = jnp.maximum(y, 0.0)
    b, v, co = y.shape
    return jnp.max(y.reshape(b, v // pool, pool, co), axis=2)


if __name__ == "__main__":
    key = jax.random.PRNGKey(0)
    B, V, Cin, Cout = 2, 1024, 4, 8
    k1, k2, k3, k4, k5 = jax.random.split(key, 5)

    x = jax.random.normal(k1, (B, V, Cin), jnp.float32)

    # Deterministic ring-graph adjacency, then the sym-normalized rescaled
    # Laplacian used by PyG ChebConv:  L = I - D^{-1/2} A D^{-1/2},
    # L~ = 2 L / lambda_max - I  with lambda_max = 2 for normalization='sym'.
    # TODO(synk): LaplacianLambdaMax eigen-estimation for the 'combinatorial'
    # laplacian_type is not reimplemented; only the 'normalized' path is covered.
    idx = jnp.arange(V)
    A = jnp.zeros((V, V), jnp.float32)
    A = A.at[idx, (idx + 1) % V].set(1.0)
    A = A.at[idx, (idx - 1) % V].set(1.0)
    deg = A.sum(axis=1)
    dis = 1.0 / jnp.sqrt(deg)
    L = jnp.eye(V, dtype=jnp.float32) - dis[:, None] * A * dis[None, :]
    lap = 2.0 * L / 2.0 - jnp.eye(V, dtype=jnp.float32)

    weights = 0.1 * jax.random.normal(k2, (K, Cin, Cout), jnp.float32)
    bias = 0.1 * jax.random.normal(k3, (Cout,), jnp.float32)
    gamma = 1.0 + 0.1 * jax.random.normal(k4, (Cout,), jnp.float32)
    beta = 0.1 * jax.random.normal(k5, (Cout,), jnp.float32)

    out = spherical_cheb_bn_pool(x, lap, weights, bias, gamma, beta)
    out = jax.block_until_ready(out)
    assert out.shape == (B, V // POOL, Cout)
    assert bool(jnp.all(out >= 0.0))          # post-ReLU max-pool is non-negative

    ref = reference(x, lap, weights, bias, gamma, beta)
    assert bool(jnp.allclose(out, ref, atol=5e-2, rtol=5e-2)), (
        float(jnp.max(jnp.abs(out - ref))))
    print("KERNEL_OK")
</pallas_src>

<mosaic_0001>
module attributes {stable_mosaic.version = 11 : i64} {
  func.func @lap_matmul_kernel(%arg0: i32, %arg1: memref<8x1024xf32, #tpu.memory_space<vmem>>, %arg2: memref<1024x128xf32, #tpu.memory_space<vmem>>, %arg3: memref<8x128xf32, #tpu.memory_space<vmem>>) attributes {dimension_semantics = [#tpu.dimension_semantics<parallel>], iteration_bounds = array<i64: 8>, scalar_prefetch = 0 : i64, scratch_operands = 0 : i64, tpu.core_type = #tpu.core_type<tc>, window_params = [{pipeline_mode = #tpu.pipeline_mode<synchronous>, transform_indices = @transform_0, window_bounds = array<i64: 8, 1024>}, {transform_indices = @transform_1, window_bounds = array<i64: 1024, 128>}, {transform_indices = @transform_2, window_bounds = array<i64: 8, 128>}]} {
    %c0 = arith.constant 0 : index
    %c0_0 = arith.constant 0 : index
    %0 = vector.load %arg1[%c0, %c0_0] : memref<8x1024xf32, #tpu.memory_space<vmem>>, vector<8x1024xf32>
    %c0_1 = arith.constant 0 : index
    %c0_2 = arith.constant 0 : index
    %1 = vector.load %arg2[%c0_1, %c0_2] : memref<1024x128xf32, #tpu.memory_space<vmem>>, vector<1024x128xf32>
    %cst = arith.constant dense<0.000000e+00> : vector<8x128xf32>
    %2 = tpu.matmul %0, %1, %cst {dimension_numbers = #tpu.dot_dimension_numbers<[1], [0], [0], [1], [0, 0, 1, 1], [], []>} : vector<8x1024xf32>, vector<1024x128xf32>, vector<8x128xf32> -> vector<8x128xf32>
    %c0_3 = arith.constant 0 : index
    %c0_4 = arith.constant 0 : index
    %3 = vector.load %arg3[%c0_3, %c0_4] : memref<8x128xf32, #tpu.memory_space<vmem>>, vector<8x128xf32>
    tpu.vector_store %arg3[%c0_3, %c0_4], %2 {strides = array<i32>} : memref<8x128xf32, #tpu.memory_space<vmem>>, vector<8x128xf32>,
    return
  }
  func.func @transform_0(%arg0: i32) -> (i32, i32) {
    %c0_i32 = arith.constant 0 : i32
    %c0_i32_0 = arith.constant 0 : i32
    %c0_i32_1 = arith.constant 0 : i32
    return %c0_i32, %c0_i32_0 : i32, i32
  }
  func.func @transform_1(%arg0: i32) -> (i32, i32) {
    %c0_i32 = arith.constant 0 : i32
    %c0_i32_0 = arith.constant 0 : i32
    return %c0_i32, %arg0 : i32, i32
  }
  func.func @transform_2(%arg0: i32) -> (i32, i32) {
    %c0_i32 = arith.constant 0 : i32
    %c0_i32_0 = arith.constant 0 : i32
    return %c0_i32, %arg0 : i32, i32
  }
}

</mosaic_0001>

<bundles_post_ra>
// kernel: tpu_custom_call.1
= control target key start
LH: loop header
LB: loop body
LE: loop exit
PB: predicated region body
PF: predicated region fallthrough
CT: control target
= control target key end

     0   :  { %7 = vsyncpa [#allocation3], 0  ;;  %s1505_s0 = inlined_call_operand.hbm [shape: f32[8,1024], index: 0, kind: input, shape index: {}]   ;;  %s1506_s1 = inlined_call_operand.hbm [shape: f32[1024,1024], index: 1, kind: input, shape index: {}]   ;;  %s1507_s2 = inlined_call_operand.hbm [shape: f32[8,1024], index: 2, kind: output, shape index: {}]  }
   0x1   :  { %8 = vsyncpa [#allocation6], 0 }
   0x2   :  { %10 = vsyncpa [#allocation6 + $0x1], 0 }
   0x3   :  { %11 = vsyncpa [#allocation4], 0 }
   0x4   :  { %13 = vsyncpa [#allocation4 + $0x1], 0  ;;  %s1180_s9 = smov 0   ;;  %s1182_s10 = smov 0  }
   0x5   :  { %s1184_s11 = smov 0   ;;  %s1186_s12 = smov 0  }
   0x6 LB: > { %s1201_s13 = sadd.s32 4294967295, %s1157_s12   ;;  %s687_s14 = sadd.s32 4294967294, %s1157_s12   ;;  %s1157_s12 = sphi %s1186_s12, %s1530_s12   ;;  %s1153_s11 = sphi %s1184_s11, %s1529_s11   ;;  %s1149_s10 = sphi %s1182_s10, %s1528_s10   ;;  %s1145_s9 = sphi %s1180_s9, %s1527_s9  }
   0x7   : > { %s1205_s15 = sadd.s32 1, %s1157_s12   ;;  %s47_s16 = sadd.s32 1, %s1153_s11 }
   0x8   : > { %s44_s17 = ssub.s32 %s1157_s12, %s1205_s15  ;;  %p54_p0 = scmp.ne.s32.totalorder %s1153_s11, %s1149_s10 }
   0x9   : > { %p45_p1 = scmp.eq.s32.totalorder %s44_s17, 0  ;;  %p55_p2 = scmp.eq.s32.totalorder %s1157_s12, 0 }
   0xa   : > { %p60_p3 = scmp.ne.s32.totalorder %s1149_s10, %s1145_s9  ;;  %p1508_p4 = scmp.eq.s32.totalorder %s1201_s13, 0 }
   0xb   : > { %s1217_s18 = scalar_select %p45_p1, %s1153_s11, %s47_s16  }
   0xc   : > { %p1219_p5 = por %p55_p2, %p54_p0  ;;  %p1225_p6 = por %p1508_p4, %p60_p3 }
   0xd   : > { %p84_p7 = scmp.eq.s32.totalorder %s1201_s13, 7  ;;  %p90_p8 = scmp.eq.s32.totalorder %s687_s14, 7 }
   0xe   : > { %s1514_s20 = scalar_select %p1225_p6, 1, 0 }
   0xf   : > { %p688_p9 = scmp.ge.s32.totalorder %s1157_s12, 1  ;;  %p97_p10 = scmp.lt.s32.totalorder %s1157_s12, 9 }
  0x10   : > { %p1232_p11 = por %p84_p7, %p54_p0  ;;  %p1236_p12 = por %p90_p8, %p60_p3 }
  0x11   : > { %p1240_p13 = pnand %p688_p9, %p97_p10  ;;  %s1159_s24 = smov [#allocation2]  }
  0x12   : > { %s1515_s21 = scalar_select %p1232_p11, 1, 0 }
  0x13   : > { %s1516_s22 = scalar_select %p1236_p12, 1, 0 }
  0x14   : > { %s1517_s23 = scalar_select %p1240_p13, 1, 0 }
  0x15   : > { %p977_p1 = pneg %p1240_p13  ;;  %s110_s25 = sshll.u32 %s1159_s24, 4  ;;  %s111_s25 = int_to_ptr.vmem [resolvable:$true] %s110_s25 }
  0x16   : > { %p990_p2 = scmp.lt.s32.totalorder %s1157_s12, 8  ;;  %s121_s27 = sand.u32 1, %s1153_s11  }
  0x17   : > { %p1249_p0 = pnand %p977_p1, %p1508_p4  ;;  %s691_s29 = sshll.u32 %s121_s27, 10 }
  0x18   : > { %p1256_p3 = pnand %p990_p2, %p1219_p5  ;;  %s1029_s4 = scalar_lea.hbm %s1505_s0, 1024 }
  0x19   : > { %p1030_p7 = scmp.ne.s32.totalorder %s1505_s0, %s1029_s4  ;;  %p1031_p8 = pneg %p1249_p0 }
  0x1a   : > { %s1519_s28 = scalar_select %p1256_p3, 1, 0 }
  0x1b   : > { %p1032_p9 = pnand %p1031_p8, %p1030_p7  ;;  %p1036_p5 = scmp.lt.u32.totalorder %s1029_s4, %s1505_s0 }
  0x1d   : > { %p1033_p10 = pneg %p1032_p9 }
  0x1f   : > { %p1038_p1 = pnand %p1036_p5, %p1033_p10 }
  0x21   : > { %1041 = shalt.err (!%p1038_p1)
}
  0x22   : > { %s1042_s14 = scalar_lea.vmem %s111_s25, 1024  ;;  %p1050_p11 = scmp.lt.s32.totalorder %s111_s25, %s111_s25 }
  0x23   : > { %p1043_p2 = scmp.ne.s32.totalorder %s111_s25, %s1042_s14  ;;  %p1051_p6 = scmp.lt.s32.totalorder %s1042_s14, %s1042_s14 }
  0x25   : > { %p1045_p4 = pnand %p1043_p2, %p1031_p8  ;;  %p1052_p13 = por %p1051_p6, %p1050_p11 }
  0x27   : > { %p1046_p12 = pneg %p1045_p4 }
  0x29   : > { %p1053_p3 = pnand %p1052_p13, %p1046_p12 }
  0x2b   : > { %1056 = shalt.err (!%p1053_p3)
}
  0x2c   : > { %980 = dma.hbm_to_vmem [thread:$0]  (!%p1249_p0), %s1505_s0, 1024, %s111_s25, [#allocation3]  }
  0x2d   : > { %s692_s19 = sshll.u32 %s1157_s12, 7  ;;  %s125_s24 = scalar_lea.vmem [#allocation5], %s691_s29 }
  0x2e   : > { %s131_s30 = sshll.u32 %s125_s24, 4  ;;  %s1280_s5 = scalar_lea.hbm %s1506_s1, %s692_s19  ;;  %s1282_s30 = int_to_ptr.vmem [resolvable:$true] %s131_s30 }
  0x2f   : > { %s1284_s26 = scalar_lea.sflag [#allocation6], %s121_s27  ;;  %s1057_s6 = scalar_lea.hbm %s1280_s5, 16384 }
  0x30   : > { %p1058_p4 = scmp.ne.s32.totalorder %s1280_s5, %s1057_s6  ;;  %p1520_p6 = scmp.ne.s32.totalorder %s1519_s28, 0 }
  0x31   : > { %s1062_s7 = scalar_lea.hbm %s1506_s1, 131072  ;;  %p1063_p0 = scmp.lt.u32.totalorder %s1280_s5, %s1506_s1 }
  0x32   : > { %p1059_p11 = pneg %p1520_p6  ;;  %p1064_p3 = scmp.lt.u32.totalorder %s1062_s7, %s1057_s6 }
  0x33   : > { %p1066_p8 = scmp.lt.u32.totalorder %s1057_s6, %s1280_s5 }
  0x34   : > { %p1060_p12 = pnand %p1059_p11, %p1058_p4  ;;  %p1065_p7 = por %p1064_p3, %p1063_p0 }
  0x36   : > { %p1061_p13 = pneg %p1060_p12  ;;  %p1067_p9 = por %p1066_p8, %p1065_p7 }
  0x38   : > { %p1068_p10 = pnand %p1067_p9, %p1061_p13 }
  0x3a   : > { %1071 = shalt.err (!%p1068_p10)
}
  0x3b   : > { %s1072_s27 = scalar_lea.vmem %s1282_s30, 16384  ;;  %s1160_s16 = smov [#allocation5]  }
  0x3c   : > { %p1073_p5 = scmp.ne.s32.totalorder %s1282_s30, %s1072_s27  ;;  %s1077_s17 = sshll.u32 %s1160_s16, 4  ;;  %s1078_s17 = int_to_ptr.vmem [resolvable:$false] %s1077_s17 }
  0x3d   : > { %s1079_s19 = scalar_lea.vmem %s1078_s17, 32768  ;;  %p1080_p4 = scmp.lt.s32.totalorder %s1282_s30, %s1078_s17 }
  0x3e   : > { %p1075_p1 = pnand %p1073_p5, %p1059_p11  ;;  %p1081_p12 = scmp.lt.s32.totalorder %s1079_s19, %s1072_s27 }
  0x40   : > { %p1076_p2 = pneg %p1075_p1  ;;  %p1082_p0 = por %p1081_p12, %p1080_p4 }
  0x42   : > { %p1083_p3 = pnand %p1082_p0, %p1076_p2 }
  0x44   : > { %1086 = shalt.err (!%p1083_p3)
}
  0x45   : > { %s1161_s24 = smov 1024   ;;  %s1162_s3 = smov 128  }
  0x46   : > { %s1163_s4 = smov 8   ;;  %p1521_p11 = scmp.ne.s32.totalorder %s1517_s23, 0 }
  0x47   : > { %984 = dma.hbm_to_vmem [thread:$0]  (!%p1520_p6), %s1280_s5, 16384, %s1282_s30, %s1284_s26, %s1161_s24, %s1162_s3, %s1163_s4  }
  0x48   : > { %143 = sbr.rel (%p1521_p11) target bundleno = 385 (0x181), region = 28  ;;  %p1522_p13 = scmp.eq.s32.totalorder (!%p1521_p11), %s1201_s13, 0 }
  0x4f   : > { %1132 = dma.done.wait (%p1522_p13), [#allocation3], 1024   ;;  %p1523_p7 = pmov %p1522_p13 }
  0x50   : > { %s1319_s6 = sand.u32 1, %s1149_s10   ;;  %p1524_p6 = scmp.ne.s32.totalorder %s1514_s20, 0 }
  0x51   : > { %1134 = vsyncadd (%p1523_p7), [#allocation3], 4294966272  ;;  %s695_s25 = sshll.u32 %s1319_s6, 10  ;;  %s150_s29 = scalar_lea.sflag [#allocation6], %s1319_s6 }
  0x52   : > { %s1323_s7 = scalar_lea.vmem [#allocation5], %s695_s25 }
  0x53   : > { %1136 = dma.done.wait (%p1524_p6), %s150_s29, 16384  }
  0x54   : > { %1138 = vsyncadd (%p1524_p6), %s150_s29, 4294950912  ;;  %v198_v0 = vld [vmem:[%s1323_s7 + $0x80] sm:$0xff]  ;;  %v199_v1 = vld [vmem:[%s1323_s7 + $0x88] sm:$0xff]  ;;  %s696_s20 = sshll.u32 %s1319_s6, 3  ;;  %s698_s23 = sshll.u32 %s1201_s13, 7 }
  0x55   : > { %v230_v2 = vld [vmem:[%s1323_s7 + $0x180] sm:$0xff]  ;;  %v841_v3 = vpack.c.bf16 %v199_v1, %v198_v0  ;;  %v231_v4 = vld [vmem:[%s1323_s7 + $0x188] sm:$0xff]  ;;  %v200_v11 = vld [vmem:[%s1323_s7 + $0x90] sm:$0xff]  ;;  %s173_s28 = scalar_lea.vmem [#allocation7], %s696_s20  ;;  %s1462_s8 = scalar_lea.hbm %s1507_s2, %s698_s23 }
  0x56   : > { %v182_v5 = vld [vmem:[%s1323_s7] sm:$0xff]  ;;  %v183_v6 = vld [vmem:[%s1323_s7 + $0x8] sm:$0xff]  ;;  %v873_v7 = vpack.c.bf16 %v231_v4, %v230_v2  ;;  %v201_v13 = vld [vmem:[%s1323_s7 + $0x98] sm:$0xff]  ;;  %s605_s30 = sshll.u32 %s173_s28, 4  ;;  %s592_s14 = scalar_lea.sflag [#allocation4], %s1319_s6  ;;  %s1464_s30 = int_to_ptr.vmem [resolvable:$true] %s605_s30 }
  0x57   : > { %v843_v8 = vpack.c.bf16 %v183_v6, %v182_v5  ;;  %v214_v9 = vld [vmem:[%s1323_s7 + $0x100] sm:$0xff]  ;;  %v215_v10 = vld [vmem:[%s1323_s7 + $0x108] sm:$0xff]  ;;  %842 = vmatprep.subr.bf16.mxu0 %v841_v3  ;;  %v232_v14 = vld [vmem:[%s1323_s7 + $0x190] sm:$0xff]  ;;  %v845_v16 = vpack.c.bf16 %v201_v13, %v200_v11  ;;  %s1087_s27 = scalar_lea.vmem %s1464_s30, 128  ;;  %p1525_p9 = scmp.ne.s32.totalorder %s1515_s21, 0 }
  0x58   : > { %v875_v12 = vpack.c.bf16 %v215_v10, %v214_v9  ;;  %v233_v15 = vld [vmem:[%s1323_s7 + $0x198] sm:$0xff]  ;;  %874 = vmatprep.subr.bf16.mxu1 %v873_v7  ;;  %v184_v18 = vld [vmem:[%s1323_s7 + $0x10] sm:$0xff]  ;;  %v202_v23 = vld [vmem:[%s1323_s7 + $0xa0] sm:$0xff]  ;;  %p1088_p8 = scmp.ne.s32.totalorder %s1464_s30, %s1087_s27  ;;  %s1164_s13 = smov [#allocation7]  }
  0x59   : > { %844 = vmatpush3.bf16.msra.mxu0 %v843_v8  ;;  %v877_v17 = vpack.c.bf16 %v233_v15, %v232_v14  ;;  %v185_v19 = vld [vmem:[%s1323_s7 + $0x18] sm:$0xff]  ;;  %v216_v20 = vld [vmem:[%s1323_s7 + $0x110] sm:$0xff]  ;;  %v203_v24 = vld [vmem:[%s1323_s7 + $0xa8] sm:$0xff]  ;;  %s1091_s16 = sshll.u32 %s1164_s13, 4  ;;  %s1092_s16 = int_to_ptr.vmem [resolvable:$false] %s1091_s16 }
  0x5a   : > { %876 = vmatpush3.bf16.msra.mxu1 %v875_v12  ;;  %v847_v21 = vpack.c.bf16 %v185_v19, %v184_v18  ;;  %v217_v22 = vld [vmem:[%s1323_s7 + $0x118] sm:$0xff]  ;;  %846 = vmatprep.subr.bf16.mxu0 %v845_v16  ;;  %v849_v26 = vpack.c.bf16 %v203_v24, %v202_v23  ;;  %v234_v27 = vld [vmem:[%s1323_s7 + $0x1a0] sm:$0xff]  ;;  %v235_v28 = vld [vmem:[%s1323_s7 + $0x1a8] sm:$0xff]  ;;  %p1089_p10 = pnand %p1088_p8, %p1525_p9  ;;  %s1093_s17 = scalar_lea.vmem %s1092_s16, 256 }
  0x5b   : > { %878 = vmatprep.subr.bf16.mxu1 %v877_v17  ;;  %v879_v25 = vpack.c.bf16 %v217_v22, %v216_v20  ;;  %v186_v29 = vld [vmem:[%s1323_s7 + $0x20] sm:$0xff]  ;;  %v881_v30 = vpack.c.bf16 %v235_v28, %v234_v27  ;;  %v187_v31 = vld [vmem:[%s1323_s7 + $0x28] sm:$0xff]  ;;  %v204_v35 = vld [vmem:[%s1323_s7 + $0xb0] sm:$0xff]  ;;  %p1094_p1 = scmp.lt.s32.totalorder %s1464_s30, %s1092_s16  ;;  %p1095_p2 = scmp.lt.s32.totalorder %s1093_s17, %s1087_s27 }
  0x5c   : > { %v218_v32 = vld [vmem:[%s1323_s7 + $0x120] sm:$0xff]  ;;  %v219_v33 = vld [vmem:[%s1323_s7 + $0x128] sm:$0xff]  ;;  %v851_v34 = vpack.c.bf16 %v187_v31, %v186_v29  ;;  %v205_v36 = vld [vmem:[%s1323_s7 + $0xb8] sm:$0xff]  ;;  %p1090_p5 = pneg %p1089_p10 }
  0x5d   : > { %848 = vmatpush3.bf16.msra.mxu0 %v847_v21  ;;  %v236_v37 = vld [vmem:[%s1323_s7 + $0x1b0] sm:$0xff]  ;;  %v883_v38 = vpack.c.bf16 %v219_v33, %v218_v32  ;;  %v853_v39 = vpack.c.bf16 %v205_v36, %v204_v35  ;;  %v237_v40 = vld [vmem:[%s1323_s7 + $0x1b8] sm:$0xff]  ;;  %v206_v46 = vld [vmem:[%s1323_s7 + $0xc0] sm:$0xff]  ;;  %p1096_p4 = por %p1095_p2, %p1094_p1 }
  0x5e   : > { %880 = vmatpush3.bf16.msra.mxu1 %v879_v25  ;;  %850 = vmatprep.subr.bf16.mxu0 %v849_v26  ;;  %v188_v41 = vld [vmem:[%s1323_s7 + $0x30] sm:$0xff]  ;;  %v189_v42 = vld [vmem:[%s1323_s7 + $0x38] sm:$0xff]  ;;  %v885_v43 = vpack.c.bf16 %v237_v40, %v236_v37  ;;  %v207_v47 = vld [vmem:[%s1323_s7 + $0xc8] sm:$0xff] }
  0x5f   : > { %882 = vmatprep.subr.bf16.mxu1 %v881_v30  ;;  %v220_v44 = vld [vmem:[%s1323_s7 + $0x130] sm:$0xff]  ;;  %v221_v45 = vld [vmem:[%s1323_s7 + $0x138] sm:$0xff]  ;;  %v238_v48 = vld [vmem:[%s1323_s7 + $0x1c0] sm:$0xff]  ;;  %v855_v50 = vpack.c.bf16 %v189_v42, %v188_v41  ;;  %v857_v52 = vpack.c.bf16 %v207_v47, %v206_v46  ;;  %p1097_p12 = pnand %p1096_p4, %p1090_p5 }
  0x60   : > { %v239_v49 = vld [vmem:[%s1323_s7 + $0x1c8] sm:$0xff]  ;;  %v887_v51 = vpack.c.bf16 %v221_v45, %v220_v44  ;;  %v190_v53 = vld [vmem:[%s1323_s7 + $0x40] sm:$0xff]  ;;  %v208_v58 = vld [vmem:[%s1323_s7 + $0xd0] sm:$0xff] }
  0x61   : > { %852 = vmatpush3.bf16.msra.mxu0 %v851_v34  ;;  %v191_v54 = vld [vmem:[%s1323_s7 + $0x48] sm:$0xff]  ;;  %v222_v55 = vld [vmem:[%s1323_s7 + $0x140] sm:$0xff]  ;;  %v889_v56 = vpack.c.bf16 %v239_v49, %v238_v48  ;;  %v209_v59 = vld [vmem:[%s1323_s7 + $0xd8] sm:$0xff] }
  0x62   : > { %884 = vmatpush3.bf16.msra.mxu1 %v883_v38  ;;  %854 = vmatprep.subr.bf16.mxu0 %v853_v39  ;;  %v223_v57 = vld [vmem:[%s1323_s7 + $0x148] sm:$0xff]  ;;  %v240_v60 = vld [vmem:[%s1323_s7 + $0x1d0] sm:$0xff]  ;;  %v241_v61 = vld [vmem:[%s1323_s7 + $0x1d8] sm:$0xff]  ;;  %v859_v62 = vpack.c.bf16 %v191_v54, %v190_v53  ;;  %v861_v0 = vpack.c.bf16 %v209_v59, %v208_v58 }
  0x63   : > { %886 = vmatprep.subr.bf16.mxu1 %v885_v43  ;;  %v891_v63 = vpack.c.bf16 %v223_v57, %v222_v55  ;;  %v192_v1 = vld [vmem:[%s1323_s7 + $0x50] sm:$0xff]  ;;  %v193_v2 = vld [vmem:[%s1323_s7 + $0x58] sm:$0xff]  ;;  %v893_v4 = vpack.c.bf16 %v241_v61, %v240_v60  ;;  %v210_v6 = vld [vmem:[%s1323_s7 + $0xe0] sm:$0xff] }
  0x64   : > { %v224_v3 = vld [vmem:[%s1323_s7 + $0x150] sm:$0xff]  ;;  %v225_v5 = vld [vmem:[%s1323_s7 + $0x158] sm:$0xff]  ;;  %v211_v7 = vld [vmem:[%s1323_s7 + $0xe8] sm:$0xff]  ;;  %v863_v10 = vpack.c.bf16 %v193_v2, %v192_v1 }
  0x65   : > { %856 = vmatpush3.bf16.msra.mxu0 %v855_v50  ;;  %v242_v8 = vld [vmem:[%s1323_s7 + $0x1e0] sm:$0xff]  ;;  %v243_v9 = vld [vmem:[%s1323_s7 + $0x1e8] sm:$0xff]  ;;  %v895_v13 = vpack.c.bf16 %v225_v5, %v224_v3  ;;  %v865_v14 = vpack.c.bf16 %v211_v7, %v210_v6  ;;  %v177_v17 = vld [vmem:[#allocation2 + $0x18] sm:$0xff] }
  0x66   : > { %888 = vmatpush3.bf16.msra.mxu1 %v887_v51  ;;  %858 = vmatprep.subr.bf16.mxu0 %v857_v52  ;;  %v194_v11 = vld [vmem:[%s1323_s7 + $0x60] sm:$0xff]  ;;  %v195_v12 = vld [vmem:[%s1323_s7 + $0x68] sm:$0xff]  ;;  %v897_v18 = vpack.c.bf16 %v243_v9, %v242_v8  ;;  %v212_v20 = vld [vmem:[%s1323_s7 + $0xf0] sm:$0xff] }
  0x67   : > { %890 = vmatprep.subr.bf16.mxu1 %v889_v56  ;;  %v226_v15 = vld [vmem:[%s1323_s7 + $0x160] sm:$0xff]  ;;  %v175_v16 = vld [vmem:[#allocation2 + $0x8] sm:$0xff]  ;;  %v213_v21 = vld [vmem:[%s1323_s7 + $0xf8] sm:$0xff]  ;;  %444 = vmatprep.mubr.f32.mxu1 %v177_v17  ;;  %v867_v24 = vpack.c.bf16 %v195_v12, %v194_v11 }
  0x68   : > { %v227_v19 = vld [vmem:[%s1323_s7 + $0x168] sm:$0xff]  ;;  %374 = vmatprep.mubr.f32.mxu0 %v175_v16  ;;  %v244_v22 = vld [vmem:[%s1323_s7 + $0x1f0] sm:$0xff]  ;;  %v245_v23 = vld [vmem:[%s1323_s7 + $0x1f8] sm:$0xff]  ;;  %v869_v26 = vpack.c.bf16 %v213_v21, %v212_v20 }
  0x69   : > { %860 = vmatpush3.bf16.msra.mxu0 %v859_v62  ;;  %v899_v25 = vpack.c.bf16 %v227_v19, %v226_v15  ;;  %v196_v27 = vld [vmem:[%s1323_s7 + $0x70] sm:$0xff]  ;;  %v197_v28 = vld [vmem:[%s1323_s7 + $0x78] sm:$0xff]  ;;  %v901_v30 = vpack.c.bf16 %v245_v23, %v244_v22  ;;  %v262_v32 = vld [vmem:[%s1323_s7 + $0x280] sm:$0xff] }
  0x6a   : > { %892 = vmatpush3.bf16.msra.mxu1 %v891_v63  ;;  %862 = vmatprep.subr.bf16.mxu0 %v861_v0  ;;  %v228_v29 = vld [vmem:[%s1323_s7 + $0x170] sm:$0xff]  ;;  %v229_v31 = vld [vmem:[%s1323_s7 + $0x178] sm:$0xff]  ;;  %v263_v33 = vld [vmem:[%s1323_s7 + $0x288] sm:$0xff]  ;;  %v871_v36 = vpack.c.bf16 %v197_v28, %v196_v27 }
  0x6b   : > { %894 = vmatprep.subr.bf16.mxu1 %v893_v4  ;;  %v294_v34 = vld [vmem:[%s1323_s7 + $0x380] sm:$0xff]  ;;  %v295_v35 = vld [vmem:[%s1323_s7 + $0x388] sm:$0xff]  ;;  %v903_v37 = vpack.c.bf16 %v229_v31, %v228_v29  ;;  %v905_v38 = vpack.c.bf16 %v263_v33, %v262_v32  ;;  %v264_v44 = vld [vmem:[%s1323_s7 + $0x290] sm:$0xff] }
  0x6c   : > { %v246_v39 = vld [vmem:[%s1323_s7 + $0x200] sm:$0xff]  ;;  %v247_v40 = vld [vmem:[%s1323_s7 + $0x208] sm:$0xff]  ;;  %v937_v42 = vpack.c.bf16 %v295_v35, %v294_v34  ;;  %v265_v45 = vld [vmem:[%s1323_s7 + $0x298] sm:$0xff] }
  0x6d   : > { %864 = vmatpush3.bf16.msra.mxu0 %v863_v10  ;;  %v278_v41 = vld [vmem:[%s1323_s7 + $0x300] sm:$0xff]  ;;  %v279_v43 = vld [vmem:[%s1323_s7 + $0x308] sm:$0xff]  ;;  %v296_v46 = vld [vmem:[%s1323_s7 + $0x390] sm:$0xff]  ;;  %v907_v50 = vpack.c.bf16 %v247_v40, %v246_v39  ;;  %v909_v52 = vpack.c.bf16 %v265_v45, %v264_v44 }
  0x6e   : > { %896 = vmatpush3.bf16.msra.mxu1 %v895_v13  ;;  %866 = vmatprep.subr.bf16.mxu0 %v865_v14  ;;  %v297_v47 = vld [vmem:[%s1323_s7 + $0x398] sm:$0xff]  ;;  %v174_v48 = vld [vmem:[#allocation2] sm:$0xff]  ;;  %v176_v49 = vld [vmem:[#allocation2 + $0x10] sm:$0xff]  ;;  %v939_v51 = vpack.c.bf16 %v279_v43, %v278_v41 }
  0x6f   : > { %898 = vmatprep.subr.bf16.mxu1 %v897_v18  ;;  %v248_v53 = vld [vmem:[%s1323_s7 + $0x210] sm:$0xff]  ;;  %v249_v54 = vld [vmem:[%s1323_s7 + $0x218] sm:$0xff]  ;;  %v941_v56 = vpack.c.bf16 %v297_v47, %v296_v46  ;;  %v266_v58 = vld [vmem:[%s1323_s7 + $0x2a0] sm:$0xff] }
  0x70   : > { %v280_v55 = vld [vmem:[%s1323_s7 + $0x310] sm:$0xff]  ;;  %v281_v57 = vld [vmem:[%s1323_s7 + $0x318] sm:$0xff]  ;;  %v267_v59 = vld [vmem:[%s1323_s7 + $0x2a8] sm:$0xff]  ;;  %v911_v62 = vpack.c.bf16 %v249_v54, %v248_v53 }
  0x71   : > { %868 = vmatpush3.bf16.msra.mxu0 %v867_v24  ;;  %v298_v60 = vld [vmem:[%s1323_s7 + $0x3a0] sm:$0xff]  ;;  %v299_v61 = vld [vmem:[%s1323_s7 + $0x3a8] sm:$0xff]  ;;  %v943_v63 = vpack.c.bf16 %v281_v57, %v280_v55  ;;  %v913_v0 = vpack.c.bf16 %v267_v59, %v266_v58  ;;  %v268_v6 = vld [vmem:[%s1323_s7 + $0x2b0] sm:$0xff] }
  0x72   : > { %900 = vmatpush3.bf16.msra.mxu1 %v899_v25  ;;  %870 = vmatprep.subr.bf16.mxu0 %v869_v26  ;;  %v250_v1 = vld [vmem:[%s1323_s7 + $0x220] sm:$0xff]  ;;  %v251_v2 = vld [vmem:[%s1323_s7 + $0x228] sm:$0xff]  ;;  %v945_v4 = vpack.c.bf16 %v299_v61, %v298_v60  ;;  %v269_v7 = vld [vmem:[%s1323_s7 + $0x2b8] sm:$0xff] }
  0x73   : > { %902 = vmatprep.subr.bf16.mxu1 %v901_v30  ;;  %v282_v3 = vld [vmem:[%s1323_s7 + $0x320] sm:$0xff]  ;;  %v283_v5 = vld [vmem:[%s1323_s7 + $0x328] sm:$0xff]  ;;  %v300_v8 = vld [vmem:[%s1323_s7 + $0x3b0] sm:$0xff]  ;;  %v915_v10 = vpack.c.bf16 %v251_v2, %v250_v1  ;;  %v917_v12 = vpack.c.bf16 %v269_v7, %v268_v6 }
  0x74   : > { %v301_v9 = vld [vmem:[%s1323_s7 + $0x3b8] sm:$0xff]  ;;  %v947_v11 = vpack.c.bf16 %v283_v5, %v282_v3  ;;  %v252_v13 = vld [vmem:[%s1323_s7 + $0x230] sm:$0xff]  ;;  %v270_v18 = vld [vmem:[%s1323_s7 + $0x2c0] sm:$0xff] }
  0x75   : > { %872 = vmatpush3.bf16.msra.mxu0 %v871_v36  ;;  %v253_v14 = vld [vmem:[%s1323_s7 + $0x238] sm:$0xff]  ;;  %v284_v15 = vld [vmem:[%s1323_s7 + $0x330] sm:$0xff]  ;;  %v949_v16 = vpack.c.bf16 %v301_v9, %v300_v8  ;;  %v271_v19 = vld [vmem:[%s1323_s7 + $0x2c8] sm:$0xff] }
  0x76   : > { %904 = vmatpush3.bf16.msra.mxu1 %v903_v37  ;;  %906 = vmatprep.subr.bf16.mxu0 %v905_v38  ;;  %v285_v17 = vld [vmem:[%s1323_s7 + $0x338] sm:$0xff]  ;;  %v302_v20 = vld [vmem:[%s1323_s7 + $0x3c0] sm:$0xff]  ;;  %v303_v21 = vld [vmem:[%s1323_s7 + $0x3c8] sm:$0xff]  ;;  %v919_v22 = vpack.c.bf16 %v253_v14, %v252_v13  ;;  %v921_v26 = vpack.c.bf16 %v271_v19, %v270_v18 }
  0x77   : > { %938 = vmatprep.subr.bf16.mxu1 %v937_v42  ;;  %v179_v23 = vld [vmem:[#allocation2 + $0x28] sm:$0xff]  ;;  %v181_v24 = vld [vmem:[#allocation2 + $0x38] sm:$0xff]  ;;  %v951_v25 = vpack.c.bf16 %v285_v17, %v284_v15  ;;  %v254_v27 = vld [vmem:[%s1323_s7 + $0x240] sm:$0xff]  ;;  %v953_v30 = vpack.c.bf16 %v303_v21, %v302_v20 }
  0x78   : > { %375 = vmatmul.mubr.f32.vlgmr.msra.gmra.mrb[0].mxu0 %v174_v48  ;;  %v255_v28 = vld [vmem:[%s1323_s7 + $0x248] sm:$0xff]  ;;  %v286_v29 = vld [vmem:[%s1323_s7 + $0x340] sm:$0xff]  ;;  %v272_v32 = vld [vmem:[%s1323_s7 + $0x2d0] sm:$0xff] }
  0x79   : > { %445 = vmatmul.mubr.f32.vlgmr.msra.gmra.mrb[0].mxu1 %v176_v49  ;;  %908 = vmatpush3.bf16.msra.mxu0 %v907_v50  ;;  %v287_v31 = vld [vmem:[%s1323_s7 + $0x348] sm:$0xff]  ;;  %v273_v33 = vld [vmem:[%s1323_s7 + $0x2d8] sm:$0xff]  ;;  %v304_v34 = vld [vmem:[%s1323_s7 + $0x3d0] sm:$0xff]  ;;  %v923_v36 = vpack.c.bf16 %v255_v28, %v254_v27 }
  0x7a   : > { %940 = vmatpush3.bf16.msra.mxu1 %v939_v51  ;;  %910 = vmatprep.subr.bf16.mxu0 %v909_v52  ;;  %v305_v35 = vld [vmem:[%s1323_s7 + $0x3d8] sm:$0xff]  ;;  %v955_v37 = vpack.c.bf16 %v287_v31, %v286_v29  ;;  %v925_v38 = vpack.c.bf16 %v273_v33, %v272_v32  ;;  %v256_v39 = vld [vmem:[%s1323_s7 + $0x250] sm:$0xff]  ;;  %v274_v44 = vld [vmem:[%s1323_s7 + $0x2e0] sm:$0xff] }
  0x7b   : > { %942 = vmatprep.subr.bf16.mxu1 %v941_v56  ;;  %514 = vmatprep.mubr.f32.mxu0 %v179_v23  ;;  %v257_v40 = vld [vmem:[%s1323_s7 + $0x258] sm:$0xff]  ;;  %v288_v41 = vld [vmem:[%s1323_s7 + $0x350] sm:$0xff]  ;;  %v957_v42 = vpack.c.bf16 %v305_v35, %v304_v34  ;;  %v275_v45 = vld [vmem:[%s1323_s7 + $0x2e8] sm:$0xff] }
  0x7c   : > { %584 = vmatprep.mubr.f32.mxu1 %v181_v24  ;;  %v289_v43 = vld [vmem:[%s1323_s7 + $0x358] sm:$0xff]  ;;  %v306_v46 = vld [vmem:[%s1323_s7 + $0x3e0] sm:$0xff]  ;;  %v307_v47 = vld [vmem:[%s1323_s7 + $0x3e8] sm:$0xff]  ;;  %v927_v48 = vpack.c.bf16 %v257_v40, %v256_v39  ;;  %v929_v50 = vpack.c.bf16 %v275_v45, %v274_v44 }
  0x7d   : > { %912 = vmatpush3.bf16.msra.mxu0 %v911_v62  ;;  %v959_v49 = vpack.c.bf16 %v289_v43, %v288_v41  ;;  %v258_v51 = vld [vmem:[%s1323_s7 + $0x260] sm:$0xff]  ;;  %v259_v52 = vld [vmem:[%s1323_s7 + $0x268] sm:$0xff]  ;;  %v961_v54 = vpack.c.bf16 %v307_v47, %v306_v46  ;;  %v276_v56 = vld [vmem:[%s1323_s7 + $0x2f0] sm:$0xff] }
  0x7e   : > { %944 = vmatpush3.bf16.msra.mxu1 %v943_v63  ;;  %914 = vmatprep.subr.bf16.mxu0 %v913_v0  ;;  %v290_v53 = vld [vmem:[%s1323_s7 + $0x360] sm:$0xff]  ;;  %v291_v55 = vld [vmem:[%s1323_s7 + $0x368] sm:$0xff]  ;;  %v277_v57 = vld [vmem:[%s1323_s7 + $0x2f8] sm:$0xff]  ;;  %v931_v60 = vpack.c.bf16 %v259_v52, %v258_v51 }
  0x7f   : > { %946 = vmatprep.subr.bf16.mxu1 %v945_v4  ;;  %v308_v58 = vld [vmem:[%s1323_s7 + $0x3f0] sm:$0xff]  ;;  %v309_v59 = vld [vmem:[%s1323_s7 + $0x3f8] sm:$0xff]  ;;  %v963_v61 = vpack.c.bf16 %v291_v55, %v290_v53  ;;  %v933_v62 = vpack.c.bf16 %v277_v57, %v276_v56  ;;  %v178_v6 = vld [vmem:[#allocation2 + $0x20] sm:$0xff] }
  0x80   : > { %v260_v63 = vld [vmem:[%s1323_s7 + $0x270] sm:$0xff]  ;;  %v261_v0 = vld [vmem:[%s1323_s7 + $0x278] sm:$0xff]  ;;  %v965_v1 = vpack.c.bf16 %v309_v59, %v308_v58 }
  0x81   : > { %916 = vmatpush3.bf16.msra.mxu0 %v915_v10  ;;  %v292_v2 = vld [vmem:[%s1323_s7 + $0x370] sm:$0xff]  ;;  %v293_v3 = vld [vmem:[%s1323_s7 + $0x378] sm:$0xff]  ;;  %v935_v4 = vpack.c.bf16 %v261_v0, %v260_v63 }
  0x82   : > { %948 = vmatpush3.bf16.msra.mxu1 %v947_v11  ;;  %918 = vmatprep.subr.bf16.mxu0 %v917_v12  ;;  %v967_v5 = vpack.c.bf16 %v293_v3, %v292_v2  ;;  %v180_v7 = vld [vmem:[#allocation2 + $0x30] sm:$0xff] }
  0x83   : > { %950 = vmatprep.subr.bf16.mxu1 %v949_v16 }
  0x85   : > { %920 = vmatpush3.bf16.msra.mxu0 %v919_v22 }
  0x86   : > { %952 = vmatpush3.bf16.msra.mxu1 %v951_v25  ;;  %922 = vmatprep.subr.bf16.mxu0 %v921_v26 }
  0x87   : > { %954 = vmatprep.subr.bf16.mxu1 %v953_v30 }
  0x89   : > { %924 = vmatpush3.bf16.msra.mxu0 %v923_v36 }
  0x8a   : > { %956 = vmatpush3.bf16.msra.mxu1 %v955_v37  ;;  %926 = vmatprep.subr.bf16.mxu0 %v925_v38 }
  0x8b   : > { %958 = vmatprep.subr.bf16.mxu1 %v957_v42 }
  0x8d   : > { %928 = vmatpush3.bf16.msra.mxu0 %v927_v48 }
  0x8e   : > { %960 = vmatpush3.bf16.msra.mxu1 %v959_v49  ;;  %930 = vmatprep.subr.bf16.mxu0 %v929_v50 }
  0x8f   : > { %962 = vmatprep.subr.bf16.mxu1 %v961_v54 }
  0x91   : > { %932 = vmatpush3.bf16.msra.mxu0 %v931_v60 }
  0x92   : > { %964 = vmatpush3.bf16.msra.mxu1 %v963_v61  ;;  %934 = vmatprep.subr.bf16.mxu0 %v933_v62 }
  0x93   : > { %966 = vmatprep.subr.bf16.mxu1 %v965_v1 }
  0x95   : > { %936 = vmatpush3.bf16.msra.mxu0 %v935_v4 }
  0x96   : > { %968 = vmatpush3.bf16.msra.mxu1 %v967_v5 }
  0x98   : > { %515 = vmatmul.mubr.f32.vlgmr.msra.gmra.mrb[2].mxu0 %v178_v6 }
  0x99   : > { %585 = vmatmul.mubr.f32.vlgmr.msra.gmra.mrb[2].mxu1 %v180_v7 }
 0x14b   : > { %v733_v8 = vpop.f32.mrb[0].mxu0 }
 0x14c   : > { %v768_v9 = vpop.f32.mrb[0].mxu1  ;;  %v734_v10 = vpop.f32.mrb[1].mxu0 }
 0x14d   : > { %v735_v11 = vadd.f32 %v734_v10, %v733_v8  ;;  %v769_v12 = vpop.f32.mrb[1].mxu1 }
 0x14e   : > { %v770_v13 = vadd.f32 %v769_v12, %v768_v9 }
 0x150   : > { %v447_v14 = vadd.f32 %v770_v13, %v735_v11 }
 0x16b   : > { %v803_v15 = vpop.f32.mrb[2].mxu0 }
 0x16c   : > { %v804_v16 = vpop.f32.mrb[3].mxu0  ;;  %v838_v17 = vpop.f32.mrb[2].mxu1 }
 0x16d   : > { %v805_v18 = vadd.f32 %v804_v16, %v803_v15  ;;  %v839_v19 = vpop.f32.mrb[3].mxu1 }
 0x16e   : > { %v840_v20 = vadd.f32 %v839_v19, %v838_v17 }
 0x16f   : > { %v517_v21 = vadd.f32 %v805_v18, %v447_v14 }
 0x171   : > { %v587_v22 = vadd.f32 %v840_v20, %v517_v21 }
 0x173   : > { %590 = vst [vmem:[%s173_s28] sm:$0xff] %v587_v22 }
 0x174   : > { %1100 = shalt.err (!%p1097_p12)
}
 0x175   : > { %s1101_s19 = scalar_lea.hbm %s1462_s8, 128  ;;  %s1105_s4 = scalar_lea.hbm %s1507_s2, 1024 }
 0x176   : > { %p1102_p0 = scmp.ne.s32.totalorder %s1462_s8, %s1101_s19  ;;  %p1106_p13 = scmp.lt.u32.totalorder %s1462_s8, %s1507_s2 }
 0x177   : > { %p1107_p7 = scmp.lt.u32.totalorder %s1105_s4, %s1101_s19  ;;  %p1109_p8 = scmp.lt.u32.totalorder %s1101_s19, %s1462_s8 }
 0x178   : > { %p1103_p3 = pnand %p1102_p0, %p1525_p9 }
 0x179   : > { %p1108_p6 = por %p1107_p7, %p1106_p13 }
 0x17a   : > { %p1104_p11 = pneg %p1103_p3 }
 0x17b   : > { %p1110_p10 = por %p1109_p8, %p1108_p6 }
 0x17d   : > { %p1111_p5 = pnand %p1110_p10, %p1104_p11 }
 0x17f   : > { %1114 = shalt.err (!%p1111_p5)
}
 0x180   : > { %975 = dma.vmem_to_hbm [thread:$0]  (%p1525_p9), %s1464_s30, 128, %s1462_s8, %s592_s14  }
 0x181 PF: > { %p992_p1 = scmp.ge.s32.totalorder %s1157_s12, 2  ;;  %s617_s29 = sand.u32 1, %s1145_s9  }
 0x182   : > { %p1526_p2 = scmp.ne.s32.totalorder %s1516_s22, 0  ;;  %s618_s7 = scalar_lea.sflag [#allocation4], %s617_s29 }
 0x184   : > { %p986_p4 = pnand %p992_p1, %p1526_p2 }
 0x186   : > { %1140 = dma.done.wait (!%p986_p4), %s618_s7, 128  }
 0x187   : > { %1142 = vsyncadd (!%p986_p4), %s618_s7, 4294967168  ;;  %p16_p12 = scmp.ge.s32.totalorder %s1205_s15, 10   ;;  %s1527_s9 = smov %s1149_s10 }
 0x188   : > { %s1528_s10 = smov %s1153_s11  ;;  %s1529_s11 = smov %s1217_s18 }
 0x189   : > { %s1530_s12 = smov %s1205_s15  ;;  %18 = sbr.rel (!%p16_p12) target bundleno = 6 (0x6), region = 78 }
 0x190   :  { %623 = vsyncpa [#allocation3], 1 }
 0x191   :  { %625 = vsyncpa [#allocation3 + $0x1], 1 }
 0x192   :  { %626 = vsyncpa [#allocation6], 1 }
 0x193   :  { %628 = vsyncpa [#allocation6 + $0x1], 1 }
 0x194   :  { %629 = vsyncpa [#allocation4], 1 }
 0x195   :  { %631 = vsyncpa [#allocation4 + $0x1], 1 }

</bundles_post_ra>
